<compile_context>
chip_gen: v6e
topology: v6e:2x2x1
jax: 0.10.0
libtpu: 0.0.40
codegen_flags: <defaults>
</compile_context>

<pallas_src>
import jax
import jax.numpy as jnp
from jax.experimental import pallas as pl
from jax.experimental.pallas import tpu as pltpu

LANES = 128
MAX_TILE_ROWS = 4096                      # (4096, 128) f32 block = 2 MiB per input
VMEM_LIMIT_BYTES = 48 * 1024 * 1024       # > v5e's 16 MiB scoped default

# Grid-dimension semantics values (string fallback keeps older JAX versions working).
_CORE_PARALLEL = getattr(pltpu, "CORE_PARALLEL", "parallel")
_ARBITRARY = getattr(pltpu, "ARBITRARY", "arbitrary")


def _num_tensorcores_per_chip() -> int:
    """2 on v7x (two TensorCores per chip), 1 on v5e/v6e and unknown devices."""
    try:
        kind = jax.devices()[0].device_kind.lower()
    except Exception:
        return 1
    return 2 if ("v7" in kind or "7x" in kind) else 1


def _dice_bce_partials_kernel(x_ref, t_ref, out_ref):
    """Accumulate (8,128)-shaped partial sums of p*t, p+t and bce into out_ref.

    out_ref block: (1, 3, 8, 128). Its block index is constant along the inner
    (reduction) grid axis, so it stays VMEM-resident and acts as the accumulator.
    """
    i = pl.program_id(1)

    @pl.when(i == 0)
    def _():
        out_ref[...] = jnp.zeros_like(out_ref)

    x = x_ref[...].astype(jnp.float32)
    t = t_ref[...].astype(jnp.float32)

    # Numerically stable sigmoid + BCE-with-logits sharing one exp(-|x|).
    e = jnp.exp(-jnp.abs(x))                     # in (0, 1]
    inv = 1.0 / (1.0 + e)                        # exact divide (approx recip only pays on v7x)
    p = jnp.where(x >= 0.0, inv, e * inv)        # sigmoid(x)
    bce = jnp.maximum(x, 0.0) - x * t + jnp.log1p(e)

    def fold(v):  # (tile_rows, 128) -> (8, 128) partial via vreg adds (VALU only)
        return jnp.sum(v.reshape(-1, 8, LANES), axis=0)

    out_ref[0, 0] += fold(p * t)
    out_ref[0, 1] += fold(p + t)
    out_ref[0, 2] += fold(bce)


def _partial_sums_jnp(x, t):
    """Same three partial sums for a (small) ragged tail, in plain jnp."""
    x = x.astype(jnp.float32)
    t = t.astype(jnp.float32)
    e = jnp.exp(-jnp.abs(x))
    inv = 1.0 / (1.0 + e)
    p = jnp.where(x >= 0.0, inv, e * inv)
    bce = jnp.maximum(x, 0.0) - x * t + jnp.log1p(e)
    return jnp.sum(p * t), jnp.sum(p + t), jnp.sum(bce)


def dice_bce_loss(inputs, targets, smooth=1.0):
    """DiceBCELoss forward.

    inputs: raw logits, any shape, f32 or bf16 (bf16 recommended on HBM-bound
    v5e/v6e -- halves bytes per element).  targets: same shape, values in [0, 1].
    """
    x = inputs.reshape(-1)
    t = targets.reshape(-1)
    n = x.shape[0]

    # Sublane multiple: 8 rows for 32-bit inputs, 16 for 16-bit, 32 for 8-bit.
    min_itemsize = min(x.dtype.itemsize, t.dtype.itemsize)
    row_mult = 8 if min_itemsize >= 4 else (16 if min_itemsize == 2 else 32)

    rows_avail = n // LANES
    tile_rows = (
        min(MAX_TILE_ROWS, (rows_avail // row_mult) * row_mult)
        if rows_avail >= row_mult
        else 0
    )
    block_elems = tile_rows * LANES
    num_tiles = n // block_elems if tile_rows > 0 else 0

    # Real 2-TensorCore split only on chips that actually have two TCs (v7x).
    n_slices = 2 if (_num_tensorcores_per_chip() >= 2 and num_tiles >= 2) else 1
    tiles_per_slice = num_tiles // n_slices
    num_tiles_used = tiles_per_slice * n_slices      # odd trailing tile -> jnp tail
    n_main = num_tiles_used * block_elems

    s_pt = jnp.float32(0.0)
    s_p_plus_t = jnp.float32(0.0)
    s_bce = jnp.float32(0.0)

    if num_tiles_used > 0:
        xm = x if n_main == n else x[:n_main]
        tm = t if n_main == n else t[:n_main]
        x2 = xm.reshape(num_tiles_used * tile_rows, LANES)
        t2 = tm.reshape(num_tiles_used * tile_rows, LANES)

        in_spec = pl.BlockSpec(
            (tile_rows, LANES), lambda c, i: (c * tiles_per_slice + i, 0)
        )
        out_spec = pl.BlockSpec((1, 3, 8, LANES), lambda c, i: (c, 0, 0, 0))

        if n_slices == 2:
            dim_sem = (_CORE_PARALLEL, _ARBITRARY)
        else:
            dim_sem = ("parallel", "arbitrary")

        parts = pl.pallas_call(
            _dice_bce_partials_kernel,
            out_shape=jax.ShapeDtypeStruct((n_slices, 3, 8, LANES), jnp.float32),
            grid_spec=pltpu.PrefetchScalarGridSpec(
                num_scalar_prefetch=0,
                grid=(n_slices, tiles_per_slice),
                in_specs=[in_spec, in_spec],
                out_specs=out_spec,
            ),
            compiler_params=pltpu.CompilerParams(
                dimension_semantics=dim_sem,
                vmem_limit_bytes=VMEM_LIMIT_BYTES,
            ),
        )(x2, t2)

        sums = jnp.sum(parts, axis=(0, 2, 3))  # (3,)
        s_pt = s_pt + sums[0]
        s_p_plus_t = s_p_plus_t + sums[1]
        s_bce = s_bce + sums[2]

    if n_main < n:
        # TODO(synk): fold the ragged tail into the last kernel block with an iota mask
        # instead of a separate jnp dispatch (saves one launch + one extra HBM pass).
        tp, tps, tb = _partial_sums_jnp(x[n_main:], t[n_main:])
        s_pt = s_pt + tp
        s_p_plus_t = s_p_plus_t + tps
        s_bce = s_bce + tb

    dice_loss = 1.0 - (2.0 * s_pt + smooth) / (s_p_plus_t + smooth)
    bce_mean = s_bce / n
    return bce_mean + dice_loss


def _dice_bce_ref(inputs, targets, smooth=1.0):
    x = inputs.astype(jnp.float32).reshape(-1)
    t = targets.astype(jnp.float32).reshape(-1)
    p = jax.nn.sigmoid(x)
    inter = jnp.sum(p * t)
    dice = 1.0 - (2.0 * inter + smooth) / (jnp.sum(p) + jnp.sum(t) + smooth)
    bce = jnp.mean(jnp.maximum(x, 0.0) - x * t + jnp.log1p(jnp.exp(-jnp.abs(x))))
    return bce + dice


if __name__ == "__main__":
    key = jax.random.PRNGKey(0)

    def make(shape, k, dtype=jnp.float32):
        k1, k2 = jax.random.split(k)
        logits = jax.random.normal(k1, shape, dtype=jnp.float32).astype(dtype)
        tgts = jax.random.bernoulli(k2, p=0.5, shape=shape).astype(dtype)
        return logits, tgts

    k0, k1, k2, k3 = jax.random.split(key, 4)

    # Primary small case consistent with a segmentation head output: (B, C, H, W).
    logits, targets = make((2, 4, 16, 16), k0)
    loss = jax.block_until_ready(dice_bce_loss(logits, targets, smooth=1.0))
    ref = jax.block_until_ready(_dice_bce_ref(logits, targets, smooth=1.0))
    assert jnp.allclose(loss, ref, rtol=1e-4, atol=1e-4), (loss, ref)

    # Ragged shape: exercises the plain-jnp tail path (no pad / mask arrays).
    lg, tg = make((2, 3, 17, 19), k1)
    l2 = jax.block_until_ready(dice_bce_loss(lg, tg))
    r2 = jax.block_until_ready(_dice_bce_ref(lg, tg))
    assert jnp.allclose(l2, r2, rtol=1e-4, atol=1e-4), (l2, r2)

    # Larger shape: multi-tile accumulation (+ 2-way CORE_PARALLEL split on v7x).
    lg, tg = make((4, 4, 512, 256), k2)
    l3 = jax.block_until_ready(dice_bce_loss(lg, tg))
    r3 = jax.block_until_ready(_dice_bce_ref(lg, tg))
    assert jnp.allclose(l3, r3, rtol=1e-4, atol=1e-4), (l3, r3)

    # bf16 inputs accepted as-is (recommended on HBM-read-bound v5e/v6e).
    lg, tg = make((2, 4, 32, 32), k3, dtype=jnp.bfloat16)
    l4 = jax.block_until_ready(dice_bce_loss(lg, tg))
    r4 = jax.block_until_ready(_dice_bce_ref(lg, tg))
    assert jnp.allclose(l4, r4, rtol=1e-4, atol=1e-4), (l4, r4)

    print("KERNEL_OK")
</pallas_src>

<mosaic_0001>
module attributes {stable_mosaic.version = 11 : i64} {
  func.func @_dice_bce_partials_kernel(%arg0: i32, %arg1: i32, %arg2: memref<16x128xf32, #tpu.memory_space<vmem>>, %arg3: memref<16x128xf32, #tpu.memory_space<vmem>>, %arg4: memref<1x3x8x128xf32, #tpu.memory_space<vmem>>) attributes {dimension_semantics = [#tpu.dimension_semantics<parallel>, #tpu.dimension_semantics<arbitrary>], iteration_bounds = array<i64: 1, 1>, scalar_prefetch = 0 : i64, scratch_operands = 0 : i64, tpu.core_type = #tpu.core_type<tc>, window_params = [{transform_indices = @transform_0, window_bounds = array<i64: 16, 128>}, {transform_indices = @transform_1, window_bounds = array<i64: 16, 128>}, {transform_indices = @transform_2, window_bounds = array<i64: 1, 3, 8, 128>}]} {
    %c0_i32 = arith.constant 0 : i32
    %0 = arith.cmpi eq, %arg1, %c0_i32 : i32
    %1 = arith.extui %0 : i1 to i32
    %c0_i32_0 = arith.constant 0 : i32
    %2 = arith.cmpi ne, %1, %c0_i32_0 : i32
    scf.if %2 {
      %cst_33 = arith.constant 0.000000e+00 : f32
      %49 = vector.broadcast %cst_33 : f32 to vector<1x3x8x128xf32>
      %c0_34 = arith.constant 0 : index
      %c0_35 = arith.constant 0 : index
      %c0_36 = arith.constant 0 : index
      %c0_37 = arith.constant 0 : index
      %50 = vector.load %arg4[%c0_34, %c0_35, %c0_36, %c0_37] : memref<1x3x8x128xf32, #tpu.memory_space<vmem>>, vector<1x3x8x128xf32>
      tpu.vector_store %arg4[%c0_34, %c0_35, %c0_36, %c0_37], %49 {strides = array<i32>} : memref<1x3x8x128xf32, #tpu.memory_space<vmem>>, vector<1x3x8x128xf32>,
    } else {
    }
    %c0 = arith.constant 0 : index
    %c0_1 = arith.constant 0 : index
    %3 = vector.load %arg2[%c0, %c0_1] : memref<16x128xf32, #tpu.memory_space<vmem>>, vector<16x128xf32>
    %c0_2 = arith.constant 0 : index
    %c0_3 = arith.constant 0 : index
    %4 = vector.load %arg3[%c0_2, %c0_3] : memref<16x128xf32, #tpu.memory_space<vmem>>, vector<16x128xf32>
    %5 = math.absf %3 : vector<16x128xf32>
    %cst = arith.constant 0.000000e+00 : f32
    %6 = vector.broadcast %cst : f32 to vector<16x128xf32>
    %7 = arith.subf %6, %5 : vector<16x128xf32>
    %8 = math.exp %7 : vector<16x128xf32>
    %cst_4 = arith.constant 1.000000e+00 : f32
    %9 = vector.broadcast %cst_4 : f32 to vector<16x128xf32>
    %10 = arith.addf %9, %8 : vector<16x128xf32>
    %cst_5 = arith.constant 1.000000e+00 : f32
    %11 = vector.broadcast %cst_5 : f32 to vector<16x128xf32>
    %12 = arith.divf %11, %10 : vector<16x128xf32>
    %cst_6 = arith.constant 0.000000e+00 : f32
    %13 = vector.broadcast %cst_6 : f32 to vector<16x128xf32>
    %14 = arith.cmpf oge, %3, %13 : vector<16x128xf32>
    %15 = arith.mulf %8, %12 : vector<16x128xf32>
    %16 = arith.select %14, %12, %15 : vector<16x128xi1>, vector<16x128xf32>
    %cst_7 = arith.constant 0.000000e+00 : f32
    %17 = vector.broadcast %cst_7 : f32 to vector<16x128xf32>
    %18 = arith.maximumf %3, %17 : vector<16x128xf32>
    %19 = arith.mulf %3, %4 : vector<16x128xf32>
    %20 = arith.subf %18, %19 : vector<16x128xf32>
    %21 = math.log1p %8 : vector<16x128xf32>
    %22 = arith.addf %20, %21 : vector<16x128xf32>
    %c0_8 = arith.constant 0 : index
    %c0_9 = arith.constant 0 : index
    %c0_10 = arith.constant 0 : index
    %c0_11 = arith.constant 0 : index
    %23 = vector.load %arg4[%c0_8, %c0_9, %c0_10, %c0_11] : memref<1x3x8x128xf32, #tpu.memory_space<vmem>>, vector<1x1x8x128xf32>
    %24 = vector.shape_cast %23 : vector<1x1x8x128xf32> to vector<8x128xf32>
    %25 = arith.mulf %16, %4 : vector<16x128xf32>
    %26 = vector.shape_cast %25 : vector<16x128xf32> to vector<2x8x128xf32>
    %cst_12 = arith.constant dense<0.000000e+00> : vector<8x128xf32>
    %27 = vector.multi_reduction <add>, %26, %cst_12 [0] : vector<2x8x128xf32> to vector<8x128xf32>
    %28 = arith.addf %24, %27 : vector<8x128xf32>
    %c0_13 = arith.constant 0 : index
    %c0_14 = arith.constant 0 : index
    %c0_15 = arith.constant 0 : index
    %c0_16 = arith.constant 0 : index
    %29 = vector.load %arg4[%c0_13, %c0_14, %c0_15, %c0_16] : memref<1x3x8x128xf32, #tpu.memory_space<vmem>>, vector<1x1x8x128xf32>
    %30 = vector.shape_cast %29 : vector<1x1x8x128xf32> to vector<8x128xf32>
    %31 = vector.shape_cast %28 : vector<8x128xf32> to vector<1x1x8x128xf32>
    tpu.vector_store %arg4[%c0_13, %c0_14, %c0_15, %c0_16], %31 {strides = array<i32>} : memref<1x3x8x128xf32, #tpu.memory_space<vmem>>, vector<1x1x8x128xf32>,
    %c0_17 = arith.constant 0 : index
    %c1 = arith.constant 1 : index
    %c0_18 = arith.constant 0 : index
    %c0_19 = arith.constant 0 : index
    %32 = vector.load %arg4[%c0_17, %c1, %c0_18, %c0_19] : memref<1x3x8x128xf32, #tpu.memory_space<vmem>>, vector<1x1x8x128xf32>
    %33 = vector.shape_cast %32 : vector<1x1x8x128xf32> to vector<8x128xf32>
    %34 = arith.addf %16, %4 : vector<16x128xf32>
    %35 = vector.shape_cast %34 : vector<16x128xf32> to vector<2x8x128xf32>
    %cst_20 = arith.constant dense<0.000000e+00> : vector<8x128xf32>
    %36 = vector.multi_reduction <add>, %35, %cst_20 [0] : vector<2x8x128xf32> to vector<8x128xf32>
    %37 = arith.addf %33, %36 : vector<8x128xf32>
    %c0_21 = arith.constant 0 : index
    %c1_22 = arith.constant 1 : index
    %c0_23 = arith.constant 0 : index
    %c0_24 = arith.constant 0 : index
    %38 = vector.load %arg4[%c0_21, %c1_22, %c0_23, %c0_24] : memref<1x3x8x128xf32, #tpu.memory_space<vmem>>, vector<1x1x8x128xf32>
    %39 = vector.shape_cast %38 : vector<1x1x8x128xf32> to vector<8x128xf32>
    %40 = vector.shape_cast %37 : vector<8x128xf32> to vector<1x1x8x128xf32>
    tpu.vector_store %arg4[%c0_21, %c1_22, %c0_23, %c0_24], %40 {strides = array<i32>} : memref<1x3x8x128xf32, #tpu.memory_space<vmem>>, vector<1x1x8x128xf32>,
    %c0_25 = arith.constant 0 : index
    %c2 = arith.constant 2 : index
    %c0_26 = arith.constant 0 : index
    %c0_27 = arith.constant 0 : index
    %41 = vector.load %arg4[%c0_25, %c2, %c0_26, %c0_27] : memref<1x3x8x128xf32, #tpu.memory_space<vmem>>, vector<1x1x8x128xf32>
    %42 = vector.shape_cast %41 : vector<1x1x8x128xf32> to vector<8x128xf32>
    %43 = vector.shape_cast %22 : vector<16x128xf32> to vector<2x8x128xf32>
    %cst_28 = arith.constant dense<0.000000e+00> : vector<8x128xf32>
    %44 = vector.multi_reduction <add>, %43, %cst_28 [0] : vector<2x8x128xf32> to vector<8x128xf32>
    %45 = arith.addf %42, %44 : vector<8x128xf32>
    %c0_29 = arith.constant 0 : index
    %c2_30 = arith.constant 2 : index
    %c0_31 = arith.constant 0 : index
    %c0_32 = arith.constant 0 : index
    %46 = vector.load %arg4[%c0_29, %c2_30, %c0_31, %c0_32] : memref<1x3x8x128xf32, #tpu.memory_space<vmem>>, vector<1x1x8x128xf32>
    %47 = vector.shape_cast %46 : vector<1x1x8x128xf32> to vector<8x128xf32>
    %48 = vector.shape_cast %45 : vector<8x128xf32> to vector<1x1x8x128xf32>
    tpu.vector_store %arg4[%c0_29, %c2_30, %c0_31, %c0_32], %48 {strides = array<i32>} : memref<1x3x8x128xf32, #tpu.memory_space<vmem>>, vector<1x1x8x128xf32>,
    return
  }
  func.func @transform_0(%arg0: i32, %arg1: i32) -> (i32, i32) {
    %c1_i32 = arith.constant 1 : i32
    %0 = arith.muli %arg0, %c1_i32 : i32
    %1 = arith.addi %0, %arg1 : i32
    %c0_i32 = arith.constant 0 : i32
    %c0_i32_0 = arith.constant 0 : i32
    return %1, %c0_i32 : i32, i32
  }
  func.func @transform_1(%arg0: i32, %arg1: i32) -> (i32, i32) {
    %c1_i32 = arith.constant 1 : i32
    %0 = arith.muli %arg0, %c1_i32 : i32
    %1 = arith.addi %0, %arg1 : i32
    %c0_i32 = arith.constant 0 : i32
    %c0_i32_0 = arith.constant 0 : i32
    return %1, %c0_i32 : i32, i32
  }
  func.func @transform_2(%arg0: i32, %arg1: i32) -> (i32, i32, i32, i32) {
    %c0_i32 = arith.constant 0 : i32
    %c0_i32_0 = arith.constant 0 : i32
    %c0_i32_1 = arith.constant 0 : i32
    %c0_i32_2 = arith.constant 0 : i32
    return %arg0, %c0_i32, %c0_i32_0, %c0_i32_1 : i32, i32, i32, i32
  }
}

</mosaic_0001>

<bundles_post_ra>
// kernel: tpu_custom_call.1
= control target key start
LH: loop header
LB: loop body
LE: loop exit
PB: predicated region body
PF: predicated region fallthrough
CT: control target
= control target key end

     0   :  { %7 = vsyncpa [#allocation3], 0  ;;  %s267_s0 = inlined_call_operand.hbm [shape: f32[16,128], index: 0, kind: input, shape index: {}]   ;;  %s268_s1 = inlined_call_operand.hbm [shape: f32[16,128], index: 1, kind: input, shape index: {}]   ;;  %s269_s2 = inlined_call_operand.hbm [shape: f32[1,3,8,128], index: 2, kind: output, shape index: {}]  }
   0x1   :  { %8 = vsyncpa [#allocation6], 0 }
   0x2   :  { %9 = vsyncpa [#allocation4], 0  ;;  %s229_s9 = smov [#allocation2]  }
   0x3   :  { %s19_s10 = sshll.u32 %s229_s9, 4  ;;  %s20_s10 = int_to_ptr.vmem [resolvable:$true] %s19_s10 }
   0x4   :  { %s171_s11 = scalar_lea.vmem %s20_s10, 256  ;;  %p176_p1 = scmp.lt.s32.totalorder %s20_s10, %s20_s10 }
   0x5   :  { %p172_p0 = scmp.ne.s32.totalorder %s20_s10, %s171_s11  ;;  %p177_p2 = scmp.lt.s32.totalorder %s171_s11, %s171_s11 }
   0x7   :  { %p178_p3 = por %p177_p2, %p176_p1 }
   0x9   :  { %p179_p4 = pnand %p178_p3, %p172_p0 }
   0xb   :  { %182 = shalt.err (!%p179_p4)
}
   0xc   :  { %s230_s12 = smov 128   ;;  %s231_s13 = smov 8  }
   0xd   :  { %25 = dma.hbm_to_vmem [thread:$0]  %s267_s0, 256, %s20_s10, [#allocation3], %s230_s12, %s230_s12, %s231_s13  }
   0xe   :  { %s232_s16 = smov [#allocation5]  }
   0xf   :  { %s35_s17 = sshll.u32 %s232_s16, 4  ;;  %s36_s17 = int_to_ptr.vmem [resolvable:$true] %s35_s17 }
  0x10   :  { %s191_s18 = scalar_lea.vmem %s36_s17, 256  ;;  %p196_p6 = scmp.lt.s32.totalorder %s36_s17, %s36_s17 }
  0x11   :  { %p192_p5 = scmp.ne.s32.totalorder %s36_s17, %s191_s18  ;;  %p197_p7 = scmp.lt.s32.totalorder %s191_s18, %s191_s18 }
  0x13   :  { %p198_p8 = por %p197_p7, %p196_p6 }
  0x15   :  { %p199_p9 = pnand %p198_p8, %p192_p5 }
  0x17   :  { %202 = shalt.err (!%p199_p9)
}
  0x18   :  { %41 = dma.hbm_to_vmem [thread:$0]  %s268_s1, 256, %s36_s17, [#allocation6], %s230_s12, %s230_s12, %s231_s13  }
  0x19   :  { %223 = dma.done.wait [#allocation3], 256  }
  0x1a   :  { %224 = vsyncadd [#allocation3], 4294967040 }
  0x1b   :  { %225 = dma.done.wait [#allocation6], 256  }
  0x1c   :  { %226 = vsyncadd [#allocation6], 4294967040  ;;  %v59_v0 = vld [vmem:[#allocation2] sm:$0xff]  ;;  %v60_v1 = vld [vmem:[#allocation2 + $0x8] sm:$0xff]  ;;  %s233_s0 = smov [#allocation7]  }
  0x1d   :  { %v63_v2 = vand.u32 2147483647, %v59_v0  ;;  %v64_v3 = vand.u32 2147483647, %v60_v1  ;;  %v61_v14 = vld [vmem:[#allocation5] sm:$0xff]  ;;  %v62_v15 = vld [vmem:[#allocation5 + $0x8] sm:$0xff] }
  0x1e   :  { %v83_v17 = vmax.f32 %v59_v0, 0.0  ;;  %v85_v18 = vmul.f32 %v61_v14, %v59_v0  ;;  %v84_v21 = vmax.f32 %v60_v1, 0.0  ;;  %v86_v22 = vmul.f32 %v62_v15, %v60_v1  ;;  %s132_s1 = sshll.u32 %s233_s0, 4  ;;  %s133_s1 = int_to_ptr.vmem [resolvable:$true] %s132_s1 }
  0x1f   :  { %v65_v4 = vsub.f32 0.0, %v63_v2  ;;  %v66_v5 = vsub.f32 0.0, %v64_v3  ;;  %vm77_vm0 = vcmp.ge.f32.partialorder %v59_v0, 0.0  ;;  %vm78_vm1 = vcmp.ge.f32.partialorder %v60_v1, 0.0  ;;  %s203_s21 = scalar_lea.vmem %s133_s1, 384  ;;  %p208_p11 = scmp.lt.s32.totalorder %s133_s1, %s133_s1 }
  0x20   :  { %v87_v30 = vsub.f32 %v83_v17, %v85_v18  ;;  %v88_v34 = vsub.f32 %v84_v21, %v86_v22  ;;  %p204_p10 = scmp.ne.s32.totalorder %s133_s1, %s203_s21  ;;  %p209_p12 = scmp.lt.s32.totalorder %s203_s21, %s203_s21 }
  0x21   :  { %v67_v6 = vmul.f32 1.442695, %v65_v4  ;;  %v69_v7 = vmul.f32 1.442695, %v66_v5 }
  0x22   :  { %p210_p13 = por %p209_p12, %p208_p11 }
  0x23   :  { %151 = vpow2.f32 %v67_v6 }
  0x24   :  { %153 = vpow2.f32 %v69_v7  ;;  %p211_p0 = pnand %p210_p13, %p204_p10 }
  0x30   :  { %v152_v8 = vpop.eup %151 }
  0x31   :  { %v154_v9 = vpop.eup %153  ;;  %v71_v10 = vadd.f32 1.0, %v152_v8  ;;  %v92_v12 = vmul.f32 -0.5, %v152_v8  ;;  %v95_v19 = vand.u32 2147483647, %v152_v8 }
  0x32   :  { %v72_v11 = vadd.f32 1.0, %v154_v9  ;;  %v101_v13 = vmul.f32 -0.5, %v154_v9  ;;  %v104_v23 = vand.u32 2147483647, %v154_v9 }
  0x33   :  { %155 = vrcp.f32 %v71_v10  ;;  %v93_v16 = vadd.f32 1.0, %v92_v12  ;;  %vm96_vm2 = vcmp.lt.f32.partialorder %v95_v19, 0.0004427343 }
  0x34   :  { %157 = vrcp.f32 %v72_v11  ;;  %v102_v20 = vadd.f32 1.0, %v101_v13  ;;  %vm105_vm3 = vcmp.lt.f32.partialorder %v104_v23, 0.0004427343 }
  0x35   :  { %159 = vlog2.f32 %v71_v10  ;;  %v94_v27 = vmul.f32 %v152_v8, %v93_v16 }
  0x36   :  { %161 = vlog2.f32 %v72_v11  ;;  %v103_v31 = vmul.f32 %v154_v9, %v102_v20 }
  0x40   :  { %v156_v24 = vpop.eup %155 }
  0x41   :  { %v158_v25 = vpop.eup %157  ;;  %v79_v26 = vmul.f32 %v156_v24, %v152_v8 }
  0x42   :  { %v160_v28 = vpop.eup %159  ;;  %v80_v29 = vmul.f32 %v158_v25, %v154_v9 }
  0x43   :  { %v162_v32 = vpop.eup %161  ;;  %v81_v33 = vsel %vm77_vm0, %v156_v24, %v79_v26  ;;  %v91_v35 = vmul.f32 0.6931472, %v160_v28 }
  0x44   :  { %v82_v36 = vsel %vm78_vm1, %v158_v25, %v80_v29  ;;  %v110_v37 = vmul.f32 %v81_v33, %v61_v14  ;;  %v117_v38 = vadd.f32 %v81_v33, %v61_v14  ;;  %v100_v39 = vmul.f32 0.6931472, %v162_v32 }
  0x45   :  { %v111_v40 = vmul.f32 %v82_v36, %v62_v15  ;;  %v118_v41 = vadd.f32 %v82_v36, %v62_v15  ;;  %v97_v42 = vsel %vm96_vm2, %v94_v27, %v91_v35 }
  0x46   :  { %v106_v43 = vsel %vm105_vm3, %v103_v31, %v100_v39  ;;  %v107_v44 = vadd.f32 %v97_v42, %v87_v30 }
  0x47   :  { %v112_v45 = vadd.f32 %v111_v40, %v110_v37  ;;  %v119_v46 = vadd.f32 %v118_v41, %v117_v38  ;;  %v108_v47 = vadd.f32 %v106_v43, %v88_v34 }
  0x49   :  { %v124_v48 = vadd.f32 %v108_v47, %v107_v44  ;;  %114 = vst [vmem:[#allocation7] sm:$0xff] %v112_v45  ;;  %121 = vst [vmem:[#allocation7 + $0x8] sm:$0xff] %v119_v46 }
  0x4b   :  { %126 = vst [vmem:[#allocation7 + $0x10] sm:$0xff] %v124_v48 }
  0x4c   :  { %214 = shalt.err (!%p211_p0)
}
  0x4d   :  { %138 = dma.vmem_to_hbm [thread:$0]  %s133_s1, 384, %s269_s2, [#allocation4], %s230_s12, %s230_s12, %s231_s13  }
  0x4e   :  { %227 = dma.done.wait [#allocation4], 384  }
  0x4f   :  { %228 = vsyncadd [#allocation4], 4294966912 }
  0x50   :  { %142 = vsyncpa [#allocation3], 1 }
  0x51   :  { %143 = vsyncpa [#allocation6], 1 }
  0x52   :  { %144 = vsyncpa [#allocation4], 1 }

</bundles_post_ra>
